<compile_context>
chip_gen: v7x
topology: tpu7x:2x2x1
jax: 0.10.0
libtpu: 0.0.40
codegen_flags: <defaults>
</compile_context>

<pallas_src>
import jax
import jax.numpy as jnp
from jax.experimental import pallas as pl
from jax.experimental.pallas import tpu as pltpu


def _subject_layers_kernel(subj_ref, order_ref, x_ref, w_ref, o_ref):
    # x_ref: (C, tT), w_ref: (C, D), o_ref: (D, tT).
    # Contract dim 0 (C) of both operands: out[d, t] = sum_c w[c, d] * x[c, t].
    # NOTE: for very small C, D (<~64) a VPU broadcast-FMA loop or folding
    # several same-subject batch rows into the MXU M dimension would fill the
    # MXU better (mainly v6e); the op is memory-bound so the plain MXU path is
    # kept for simplicity.
    o_ref[...] = jax.lax.dot_general(
        w_ref[...], x_ref[...],
        dimension_numbers=(((0,), (0,)), ((), ())),   # (C,D) x (C,tT) -> (D,tT)
        preferred_element_type=jnp.float32,
    ).astype(o_ref.dtype)


def _round_up(n, m):
    return ((n + m - 1) // m) * m


def _vmem_capacity_bytes():
    try:
        cap = getattr(pltpu.get_tpu_info(), "vmem_capacity_bytes", None)
        if cap:
            return int(cap)
    except Exception:
        pass
    return 64 * 1024 * 1024  # conservative (v7x-sized) fallback


def _pick_time_tile(T128, C, D, x_item, w_item, o_item, *, vmem_budget, max_tile):
    """Largest multiple-of-128 divisor of T128 whose pipelined footprint fits."""
    max_tile = max(128, _round_up(max_tile, 128))
    best = 128
    t = 128
    limit = min(T128, max_tile)
    while t <= limit:
        if T128 % t == 0:
            footprint = 2 * (C * t * x_item + D * t * o_item) + 2 * (C * D * w_item)
            if footprint <= vmem_budget:
                best = t
        t += 128
    return best


def subject_layers(x, subjects, weights, *, out_dtype=None, time_tile=None,
                   sort_by_subject=True, single_buffer_weights=None):
    """x: (B, C, T), subjects: (B,) int, weights: (S, C, D) -> (B, D, T)."""
    B, C, T = x.shape
    S, Cw, D = weights.shape
    assert Cw == C
    out_dtype = x.dtype if out_dtype is None else jnp.dtype(out_dtype)

    # Guard out-of-range subject ids (an OOB id would drive the weight DMA off
    # the array).  NOTE: PyTorch's gather would raise on bad ids; here they are
    # clamped to a valid subject instead.
    subjects = jnp.clip(subjects.astype(jnp.int32), 0, S - 1)

    # Compute dtype follows x (no standalone HBM pass casting x).  Only the
    # small weight tensor is cast; store weights pre-cast to hoist this too.
    if weights.dtype != x.dtype:
        weights = weights.astype(x.dtype)

    # Index-level batch reordering: visit batch rows in subject-sorted order so
    # consecutive outer-grid steps reuse the same weight block (Pallas skips the
    # repeated DMA) without materialising a reordered copy of x or the output.
    if sort_by_subject and B > 1:
        order = jnp.argsort(subjects).astype(jnp.int32)
    else:
        order = jnp.arange(B, dtype=jnp.int32)
    subjects_by_step = subjects[order]

    # Lane alignment only: pad T to a multiple of 128 (< 128 extra columns, and
    # no pad at all when already aligned).  The time tile divides T128 exactly.
    T128 = _round_up(T, 128)

    x_item = jnp.dtype(x.dtype).itemsize
    w_item = jnp.dtype(weights.dtype).itemsize
    o_item = jnp.dtype(out_dtype).itemsize

    vmem_cap = _vmem_capacity_bytes()
    # Scoped-VMEM ceiling: <= ~48 MiB on 64 MiB parts (v7x), <= 96 MiB on 128 MiB parts.
    vmem_cap_limit = min((vmem_cap * 3) // 4, 96 * 1024 * 1024)
    max_tile = 4096 if vmem_cap >= (96 << 20) else 2048
    if time_tile is not None:
        assert time_tile % 128 == 0, "time_tile must be a multiple of 128"
        max_tile = time_tile
    tT = _pick_time_tile(T128, C, D, x_item, w_item, o_item,
                         vmem_budget=(vmem_cap_limit * 3) // 5, max_tile=max_tile)
    nT = T128 // tT

    if T128 != T:
        x = jnp.pad(x, ((0, 0), (0, 0), (0, T128 - T)))

    # Single-buffer the (t-invariant, mostly b-invariant after sorting) weight
    # block when it is big and VMEM is small (v7x); default double-buffer else.
    w_block_bytes = C * D * w_item
    if single_buffer_weights is None:
        single_buffer_weights = (vmem_cap <= (64 << 20)) and (w_block_bytes >= (2 << 20))
    w_bufs = 1 if single_buffer_weights else 2

    per_step = 2 * (C * tT * x_item + D * tT * o_item) + w_bufs * w_block_bytes
    vmem_limit = int(min(vmem_cap_limit, max(8 * 1024 * 1024, 2 * per_step)))

    cost = pl.CostEstimate(
        flops=2 * B * C * D * T128,
        transcendentals=0,
        bytes_accessed=(B * C * T128 * x_item
                        + B * C * D * w_item
                        + B * D * T128 * o_item),
    )

    w_index_map = lambda b, t, subj, order: (subj[b], 0, 0)
    if single_buffer_weights:
        w_spec = pl.BlockSpec((pl.Squeezed(), C, D), w_index_map,
                              pipeline_mode=pl.Buffered(1))
    else:
        w_spec = pl.BlockSpec((pl.Squeezed(), C, D), w_index_map)

    grid_spec = pltpu.PrefetchScalarGridSpec(
        num_scalar_prefetch=2,            # subjects_by_step, order -> SMEM
        grid=(B, nT),                     # t innermost: weight block invariant over t
        in_specs=[
            # x[order[b], :, t*tT:(t+1)*tT]
            pl.BlockSpec((pl.Squeezed(), C, tT),
                         lambda b, t, subj, order: (order[b], 0, t)),
            # weights[subjects_sorted[b]] (no transpose; contracted on dim 0 in-kernel)
            w_spec,
        ],
        out_specs=pl.BlockSpec((pl.Squeezed(), D, tT),
                               lambda b, t, subj, order: (order[b], 0, t)),
    )

    out = pl.pallas_call(
        _subject_layers_kernel,
        out_shape=jax.ShapeDtypeStruct((B, D, T128), out_dtype),
        grid_spec=grid_spec,
        compiler_params=pltpu.CompilerParams(
            dimension_semantics=("parallel", "parallel"),
            vmem_limit_bytes=vmem_limit,
        ),
        cost_estimate=cost,
    )(subjects_by_step, order, x, weights)

    if T128 != T:
        out = out[:, :, :T]
    return out


if __name__ == "__main__":
    # Small shapes consistent with SubjectLayers(in_channels, out_channels, n_subjects).
    in_channels, out_channels, n_subjects = 8, 8, 3
    B, T = 4, 40   # T deliberately not 128-aligned: exercises the <128-col pad path

    key = jax.random.PRNGKey(0)
    kw, kx, ks = jax.random.split(key, 3)

    # Deterministic init matching __init__: randn(S, C, D) * 1/sqrt(C)
    weights = (jax.random.normal(kw, (n_subjects, in_channels, out_channels),
                                 dtype=jnp.float32) * (1.0 / in_channels ** 0.5))
    x = jax.random.normal(kx, (B, in_channels, T), dtype=jnp.float32)
    subjects = jax.random.randint(ks, (B,), 0, n_subjects, dtype=jnp.int32)

    # f32 path
    out = jax.block_until_ready(subject_layers(x, subjects, weights))
    ref = jnp.einsum("bct,bcd->bdt", x, weights[subjects])
    assert out.shape == (B, out_channels, T)
    assert jnp.allclose(out, ref, atol=1e-5, rtol=1e-5), "f32 mismatch vs reference"

    # 128-aligned T (no pad / no slice path) with repeated subjects (weight-DMA reuse).
    B2, T2 = 3, 256
    x2 = jax.random.normal(jax.random.PRNGKey(1), (B2, in_channels, T2), dtype=jnp.float32)
    subj2 = jnp.array([2, 0, 2], dtype=jnp.int32)
    out2 = jax.block_until_ready(subject_layers(x2, subj2, weights))
    ref2 = jnp.einsum("bct,bcd->bdt", x2, weights[subj2])
    assert out2.shape == (B2, out_channels, T2)
    assert jnp.allclose(out2, ref2, atol=1e-5, rtol=1e-5), "aligned-T mismatch vs reference"

    # bf16 path: x already bf16 "upstream" (no wrapper cast of x), bf16 stores.
    x_bf = x.astype(jnp.bfloat16)
    out_bf = jax.block_until_ready(
        subject_layers(x_bf, subjects, weights, out_dtype=jnp.bfloat16))
    ref_bf = jnp.einsum("bct,bcd->bdt",
                        x_bf.astype(jnp.float32),
                        weights.astype(jnp.bfloat16).astype(jnp.float32)[subjects])
    assert out_bf.shape == (B, out_channels, T)
    assert out_bf.dtype == jnp.bfloat16
    assert jnp.allclose(out_bf.astype(jnp.float32), ref_bf, atol=2e-2, rtol=2e-2), \
        "bf16 mismatch vs reference"

    print("KERNEL_OK")
</pallas_src>

<mosaic_0001>
module attributes {stable_mosaic.version = 11 : i64} {
  func.func @_subject_layers_kernel(%arg0: i32, %arg1: i32, %arg2: memref<4xi32, #tpu.memory_space<smem>>, %arg3: memref<4xi32, #tpu.memory_space<smem>>, %arg4: memref<1x8x128xf32, #tpu.memory_space<vmem>>, %arg5: memref<1x8x8xf32, #tpu.memory_space<vmem>>, %arg6: memref<1x8x128xf32, #tpu.memory_space<vmem>>) attributes {dimension_semantics = [#tpu.dimension_semantics<parallel>, #tpu.dimension_semantics<parallel>], iteration_bounds = array<i64: 4, 1>, scalar_prefetch = 2 : i64, scratch_operands = 0 : i64, tpu.core_type = #tpu.core_type<tc>, window_params = [{transform_indices = @transform_0, window_bounds = array<i64: 1, 8, 128>}, {transform_indices = @transform_1, window_bounds = array<i64: 1, 8, 8>}, {transform_indices = @transform_2, window_bounds = array<i64: 1, 8, 128>}]} {
    %c0 = arith.constant 0 : index
    %c0_0 = arith.constant 0 : index
    %c0_1 = arith.constant 0 : index
    %0 = vector.load %arg5[%c0, %c0_0, %c0_1] : memref<1x8x8xf32, #tpu.memory_space<vmem>>, vector<1x8x8xf32>
    %1 = vector.shape_cast %0 : vector<1x8x8xf32> to vector<8x8xf32>
    %c0_2 = arith.constant 0 : index
    %c0_3 = arith.constant 0 : index
    %c0_4 = arith.constant 0 : index
    %2 = vector.load %arg4[%c0_2, %c0_3, %c0_4] : memref<1x8x128xf32, #tpu.memory_space<vmem>>, vector<1x8x128xf32>
    %3 = vector.shape_cast %2 : vector<1x8x128xf32> to vector<8x128xf32>
    %cst = arith.constant dense<0.000000e+00> : vector<8x128xf32>
    %4 = tpu.matmul %1, %3, %cst {dimension_numbers = #tpu.dot_dimension_numbers<[0], [0], [1], [1], [0, 1, 1, 1], [], []>} : vector<8x8xf32>, vector<8x128xf32>, vector<8x128xf32> -> vector<8x128xf32>
    %c0_5 = arith.constant 0 : index
    %c0_6 = arith.constant 0 : index
    %c0_7 = arith.constant 0 : index
    %5 = vector.load %arg6[%c0_5, %c0_6, %c0_7] : memref<1x8x128xf32, #tpu.memory_space<vmem>>, vector<1x8x128xf32>
    %6 = vector.shape_cast %5 : vector<1x8x128xf32> to vector<8x128xf32>
    %7 = vector.shape_cast %4 : vector<8x128xf32> to vector<1x8x128xf32>
    tpu.vector_store %arg6[%c0_5, %c0_6, %c0_7], %7 {strides = array<i32>} : memref<1x8x128xf32, #tpu.memory_space<vmem>>, vector<1x8x128xf32>,
    return
  }
  func.func @transform_0(%arg0: i32, %arg1: i32, %arg2: memref<4xi32, #tpu.memory_space<smem>>, %arg3: memref<4xi32, #tpu.memory_space<smem>>) -> (i32, i32, i32) {
    %0 = arith.index_cast %arg0 : i32 to index
    %1 = memref.load %arg3[%0] : memref<4xi32, #tpu.memory_space<smem>>
    %c0_i32 = arith.constant 0 : i32
    %c0_i32_0 = arith.constant 0 : i32
    return %1, %c0_i32, %arg1 : i32, i32, i32
  }
  func.func @transform_1(%arg0: i32, %arg1: i32, %arg2: memref<4xi32, #tpu.memory_space<smem>>, %arg3: memref<4xi32, #tpu.memory_space<smem>>) -> (i32, i32, i32) {
    %0 = arith.index_cast %arg0 : i32 to index
    %1 = memref.load %arg2[%0] : memref<4xi32, #tpu.memory_space<smem>>
    %c0_i32 = arith.constant 0 : i32
    %c0_i32_0 = arith.constant 0 : i32
    %c0_i32_1 = arith.constant 0 : i32
    return %1, %c0_i32, %c0_i32_0 : i32, i32, i32
  }
  func.func @transform_2(%arg0: i32, %arg1: i32, %arg2: memref<4xi32, #tpu.memory_space<smem>>, %arg3: memref<4xi32, #tpu.memory_space<smem>>) -> (i32, i32, i32) {
    %0 = arith.index_cast %arg0 : i32 to index
    %1 = memref.load %arg3[%0] : memref<4xi32, #tpu.memory_space<smem>>
    %c0_i32 = arith.constant 0 : i32
    %c0_i32_0 = arith.constant 0 : i32
    return %1, %c0_i32, %arg1 : i32, i32, i32
  }
}

</mosaic_0001>

<bundles_post_ra>
// kernel: tpu_custom_call.1
= control target key start
LH: loop header
LB: loop body
LE: loop exit
PB: predicated region body
PF: predicated region fallthrough
CT: control target
= control target key end

     0   :  { %s1203_s0 = inlined_call_operand.hbm [shape: s32[4], index: 0, kind: input, shape index: {}]   ;;  %s1204_s2 = inlined_call_operand.hbm [shape: f32[4,8,128], index: 2, kind: input, shape index: {}]   ;;  %s1205_s3 = inlined_call_operand.hbm [shape: f32[3,8,8], index: 3, kind: input, shape index: {}]   ;;  %s1206_s4 = inlined_call_operand.hbm [shape: f32[4,8,128], index: 4, kind: output, shape index: {}]   ;;  %s1207_s1 = inlined_call_operand.vmem [shape: s32[4], index: 1, kind: input, shape index: {}]  }
   0x1   :  { %1214 = sst [smem:[#allocation24_spill]] %s1204_s2  ;;  %s615_s17 = scalar_lea.hbm %s1203_s0, 16 }
   0x2   :  { %p616_p0 = scmp.ne.s32.totalorder %s1203_s0, %s615_s17  ;;  %p619_p1 = scmp.lt.u32.totalorder %s615_s17, %s1203_s0 }
   0x4   :  { %p621_p2 = pnand %p619_p1, %p616_p0 }
   0x6   :  { %624 = shalt.err (!%p621_p2)  }
   0x7   :  { %s835_s22 = smov [#allocation3]   ;;  %s11_s27 = sshll.u32 %s1207_s1, 4  ;;  %s12_s27 = int_to_ptr.vmem [resolvable:$true] %s11_s27 }
   0x8   :  { %10 = dma.hbm_to_smem %s1203_s0, 16, %s835_s22, [#allocation2] }
   0x9   :  { %s625_s28 = scalar_lea.vmem %s12_s27, 16  ;;  %p630_p4 = scmp.lt.s32.totalorder %s12_s27, %s12_s27 }
   0xa   :  { %p626_p3 = scmp.ne.s32.totalorder %s12_s27, %s625_s28  ;;  %p631_p5 = scmp.lt.s32.totalorder %s625_s28, %s625_s28 }
   0xc   :  { %p632_p6 = por %p631_p5, %p630_p4 }
   0xe   :  { %p633_p7 = pnand %p632_p6, %p626_p3 }
  0x10   :  { %636 = shalt.err (!%p633_p7)  }
  0x11   :  { %s836_s29 = smov [#allocation4]  }
  0x12   :  { %14 = dma.vmem_to_smem %s12_s27, 16, %s836_s29, [#allocation2] }
  0x13   :  { %773 = dma.done.wait [#allocation2], 32 }
  0x14   :  { %774 = vsyncadd [#allocation2], 4294967264 }
  0x15   :  { %16 = sfence }
  0x16   :  { %17 = vsyncpa [#allocation6], 0 }
  0x17   :  { %19 = vsyncpa [#allocation6 + $0x1], 0 }
  0x18   :  { %20 = vsyncpa [#allocation9], 0 }
  0x19   :  { %22 = vsyncpa [#allocation9 + $0x1], 0 }
  0x1a   :  { %23 = vsyncpa [#allocation7], 0 }
  0x1b   :  { %25 = vsyncpa [#allocation7 + $0x1], 0  ;;  %s882_s0 = smov 0   ;;  %s884_s1 = smov 0  }
  0x1c   :  { %s886_s30 = smov 0   ;;  %s888_s5 = smov 0  }
  0x1d   :  { %s890_s6 = smov 0   ;;  %s892_s7 = smov 0  }
  0x1e   :  { %s894_s8 = smov 0   ;;  %s896_s9 = smov 0  }
  0x1f   :  { %s898_s10 = smov 0   ;;  %s900_s11 = smov 0  }
  0x20   :  { %s902_s12 = smov 0   ;;  %s904_s13 = smov 0  }
  0x21 LB: > { %1215 = sst [smem:[#allocation20_spill]] %s797_s30  ;;  %s462_s14 = sadd.s32 4294967295, %s833_s13   ;;  %s833_s13 = sphi %s904_s13, %s31_s13   ;;  %s829_s12 = sphi %s902_s12, %s1250_s12   ;;  %s825_s11 = sphi %s900_s11, %s1249_s11   ;;  %s821_s10 = sphi %s898_s10, %s1241_s10   ;;  %s817_s9 = sphi %s896_s9, %s1248_s9   ;;  %s813_s8 = sphi %s894_s8, %s1247_s8   ;;  %s809_s7 = sphi %s892_s7, %s1246_s7   ;;  %s805_s6 = sphi %s890_s6, %s1245_s6   ;;  %s801_s5 = sphi %s888_s5, %s1244_s5   ;;  %s797_s30 = sphi %s886_s30, %s1239_s30   ;;  %s793_s1 = sphi %s884_s1, %s1243_s1   ;;  %s789_s0 = sphi %s882_s0, %s1242_s0  }
  0x22   : > { %1216 = sst [smem:[#allocation21_spill]] %s821_s10  ;;  %s463_s15 = sadd.s32 4294967294, %s833_s13  }
  0x23   : > { %s43_s16 = sadd.s32 1, %s829_s12  ;;  %s47_s17 = sld [smem:[#allocation4 + %s829_s12]] }
  0x24   : > { %p45_p8 = scmp.ge.s32.totalorder %s43_s16, 4  ;;  %s54_s18 = sadd.s32 1, %s821_s10 }
  0x25   : > { %p61_p9 = scmp.ne.s32.totalorder %s821_s10, %s817_s9  ;;  %p1211_p10 = scmp.eq.s32.totalorder %s833_s13, 0 }
  0x26   : > { %s1252_s16 = smov (%p45_p8, %s43_s16), 0  ;;  %p67_p12 = scmp.ne.s32.totalorder %s817_s9, %s813_s8 }
  0x27   : > { %p952_p11 = por %p1211_p10, %p61_p9  ;;  %s48_s20 = sld [smem:[#allocation4 + %s1252_s16]] }
  0x28   : > { %p958_p13 = scmp.eq.s32.totalorder %s462_s14, 0  ;;  %s105_s22 = sld [smem:[#allocation4 + %s829_s12]] }
  0x29   : > { %s106_s23 = sld [smem:[#allocation4 + %s1252_s16]]  ;;  %s112_s25 = sadd.s32 1, %s797_s30 }
  0x2a   : > { %p966_p0 = por %p958_p13, %p67_p12  ;;  %p122_p1 = scmp.ne.s32.totalorder %s797_s30, %s793_s1 }
  0x2b   : > { %p123_p2 = scmp.eq.s32.totalorder %s462_s14, 3  ;;  %p128_p3 = scmp.ne.s32.totalorder %s793_s1, %s789_s0 }
  0x2c   : > { %s1219_s24 = scalar_select %p966_p0, 1, 0 }
  0x2d   : > { %p129_p4 = scmp.eq.s32.totalorder %s463_s15, 3  ;;  %p975_p5 = por %p123_p2, %p122_p1 }
  0x2e   : > { %s49_s27 = ssub.s32 %s47_s17, %s48_s20  ;;  %p1210_p9 = scmp.lt.s32.totalorder %s833_s13, 4 }
  0x2f   : > { %s1220_s26 = scalar_select %p975_p5, 1, 0 }
  0x30   : > { %p979_p6 = por %p129_p4, %p128_p3  ;;  %p52_p7 = scmp.eq.s32.totalorder %s49_s27, 0 }
  0x31   : > { %s107_s29 = ssub.s32 %s105_s22, %s106_s23  ;;  %s149_s15 = sand.u32 1, %s821_s10  }
  0x32   : > { %s1221_s28 = scalar_select %p979_p6, 1, 0 }
  0x33   : > { %p110_p8 = scmp.eq.s32.totalorder %s107_s29, 0  ;;  %p995_p12 = pnand %p1210_p9, %p952_p11 }
  0x34   : > { %s985_s8 = scalar_select %p52_p7, %s821_s10, %s54_s18  }
  0x35   : > { %s988_s14 = scalar_select %p110_p8, %s797_s30, %s112_s25  }
  0x36   : > { %1222 = sst [smem:[#allocation22_spill]] %s985_s8  ;;  %s466_s20 = sshll.u32 %s149_s15, 3 }
  0x37   : > { %1223 = sst [smem:[#allocation23_spill]] %s988_s14  ;;  %s153_s18 = scalar_lea.vmem [#allocation5], %s466_s20 }
  0x38   : > { %s486_s22 = scalar_select %p952_p11, [#allocation4], [#allocation11] }
  0x39   : > { %s487_s23 = scalar_select %p952_p11, %s829_s12, 0 }
  0x3a   : > { %s1254_s22 = smov (!%p1210_p9, %s486_s22), [#allocation14]  ;;  %s162_s25 = sshll.u32 %s153_s18, 4  ;;  %s1009_s25 = int_to_ptr.vmem [resolvable:$true] %s162_s25 }
  0x3b   : > { %s1256_s23 = smov (!%p1210_p9, %s487_s23), 0  ;;  %p470_p1 = scmp.ge.s32.totalorder %s833_s13, 1 }
  0x3c   : > { %s154_s27 = sld [smem:[%s1254_s22 + %s1256_s23]]  ;;  %p186_p2 = scmp.lt.s32.totalorder %s833_s13, 5 }
  0x3d   : > { %s1017_s8 = sld [smem:[#allocation3 + %s829_s12]]  ;;  %s150_s22 = scalar_lea.sflag [#allocation6], %s149_s15 }
  0x3e   : > { %p1012_p3 = pnand %p470_p1, %p186_p2  ;;  %s1020_s19 = sld [smem:[#allocation3 + %s1252_s16]] }
  0x3f   : > { %s1226_s2 = sld [smem:[#allocation24_spill]]  ;;  %p639_p7 = pneg %p995_p12 }
  0x40   : > { %s1225_s29 = scalar_select %p1012_p3, 1, 0 }
  0x42   : > { %s467_s10 = sshll.u32 %s154_s27, 7 }
  0x45   : > { %s1025_s20 = scalar_lea.hbm %s1226_s2, %s467_s10  ;;  %s642_s30 = scalar_lea.hbm %s1226_s2, 512 }
  0x46   : > { %s637_s23 = scalar_lea.hbm %s1025_s20, 128  ;;  %p643_p2 = scmp.lt.u32.totalorder %s1025_s20, %s1226_s2 }
  0x47   : > { %p638_p4 = scmp.ne.s32.totalorder %s1025_s20, %s637_s23  ;;  %p644_p9 = scmp.lt.u32.totalorder %s642_s30, %s637_s23 }
  0x48   : > { %p646_p11 = scmp.lt.u32.totalorder %s637_s23, %s1025_s20 }
  0x49   : > { %p640_p8 = pnand %p639_p7, %p638_p4  ;;  %p645_p10 = por %p644_p9, %p643_p2 }
  0x4b   : > { %p641_p1 = pneg %p640_p8  ;;  %p647_p6 = por %p646_p11, %p645_p10 }
  0x4d   : > { %p648_p5 = pnand %p647_p6, %p641_p1 }
  0x4f   : > { %651 = shalt.err (!%p648_p5)
}
  0x50   : > { %s652_s15 = scalar_lea.vmem %s1009_s25, 128  ;;  %s837_s18 = smov [#allocation5]  }
  0x51   : > { %p653_p4 = scmp.ne.s32.totalorder %s1009_s25, %s652_s15  ;;  %s657_s27 = sshll.u32 %s837_s18, 4  ;;  %s658_s27 = int_to_ptr.vmem [resolvable:$false] %s657_s27 }
  0x52   : > { %s659_s10 = scalar_lea.vmem %s658_s27, 256  ;;  %p660_p3 = scmp.lt.s32.totalorder %s1009_s25, %s658_s27 }
  0x53   : > { %p655_p8 = pnand %p653_p4, %p639_p7  ;;  %p661_p9 = scmp.lt.s32.totalorder %s659_s10, %s652_s15 }
  0x55   : > { %p656_p0 = pneg %p655_p8  ;;  %p662_p2 = por %p661_p9, %p660_p3 }
  0x57   : > { %p663_p10 = pnand %p662_p2, %p656_p0 }
  0x59   : > { %666 = shalt.err (!%p663_p10)
}
  0x5a   : > { %503 = dma.hbm_to_vmem [thread:$0]  (!%p995_p12), %s1025_s20, 128, %s1009_s25, %s150_s22  }
  0x5b   : > { %p95_p0 = scmp.ne.s32.totalorder %s805_s6, %s801_s5  ;;  %s82_s17 = sadd.s32 1, %s809_s7 }
  0x5c   : > { %p1227_p5 = scmp.eq.s32.totalorder %s833_s13, 0  ;;  %p1228_p6 = scmp.ne.s32.totalorder %s809_s7, %s805_s6 }
  0x5d   : > { %s79_s23 = ssub.s32 %s1017_s8, %s1020_s19  ;;  %p1066_p11 = por %p95_p0, %p958_p13 }
  0x5e   : > { %p91_p3 = por %p1228_p6, %p1227_p5  ;;  %p80_p7 = scmp.eq.s32.totalorder %s79_s23, 0 }
  0x5f   : > { %s169_s14 = sand.u32 1, %s809_s7   ;;  %p1230_p1 = scmp.lt.s32.totalorder %s833_s13, 4 }
  0x60   : > { %s1078_s25 = scalar_select %p80_p7, %s809_s7, %s82_s17  }
  0x61   : > { %p1073_p4 = pnand %p1230_p1, %p91_p3  ;;  %s468_s5 = sshll.u32 %s169_s14, 3 }
  0x62   : > { %s489_s20 = scalar_select %p91_p3, [#allocation3], [#allocation12] }
  0x63   : > { %s490_s22 = scalar_select %p91_p3, %s829_s12, 0 }
  0x64   : > { %p1232_p12 = pmov %p1230_p1  ;;  %p1233_p13 = pmov %p1230_p1 }
  0x65   : > { %s173_s8 = scalar_lea.vmem [#allocation8], %s468_s5  ;;  %s170_s17 = scalar_lea.sflag [#allocation9], %s169_s14 }
  0x66   : > { %s1258_s20 = smov (!%p1232_p12, %s489_s20), [#allocation15]  ;;  %s1260_s22 = smov (!%p1233_p13, %s490_s22), 0 }
  0x67   : > { %s174_s21 = sld [smem:[%s1258_s20 + %s1260_s22]]  ;;  %s181_s19 = sshll.u32 %s173_s8, 4  ;;  %s1085_s19 = int_to_ptr.vmem [resolvable:$true] %s181_s19 }
  0x68   : > { %p669_p9 = pneg %p1073_p4  ;;  %s672_s22 = scalar_lea.hbm %s1205_s3, 384 }
  0x6d   : > { %s469_s18 = sshll.u32 %s174_s21, 7 }
  0x6e   : > { %s1090_s23 = scalar_lea.hbm %s1205_s3, %s469_s18 }
  0x6f   : > { %s667_s2 = scalar_lea.hbm %s1090_s23, 128  ;;  %p673_p0 = scmp.lt.u32.totalorder %s1090_s23, %s1205_s3 }
  0x70   : > { %p668_p8 = scmp.ne.s32.totalorder %s1090_s23, %s667_s2  ;;  %p674_p5 = scmp.lt.u32.totalorder %s672_s22, %s667_s2 }
  0x71   : > { %p676_p3 = scmp.lt.u32.totalorder %s667_s2, %s1090_s23 }
  0x72   : > { %p670_p2 = pnand %p669_p9, %p668_p8  ;;  %p675_p6 = por %p674_p5, %p673_p0 }
  0x74   : > { %p671_p10 = pneg %p670_p2  ;;  %p677_p7 = por %p676_p3, %p675_p6 }
  0x76   : > { %p678_p1 = pnand %p677_p7, %p671_p10 }
  0x78   : > { %681 = shalt.err (!%p678_p1)
}
  0x79   : > { %s682_s14 = scalar_lea.vmem %s1085_s19, 128  ;;  %s838_s18 = smov [#allocation8]  }
  0x7a   : > { %p683_p12 = scmp.ne.s32.totalorder %s1085_s19, %s682_s14  ;;  %s687_s27 = sshll.u32 %s838_s18, 4  ;;  %s688_s27 = int_to_ptr.vmem [resolvable:$false] %s687_s27 }
  0x7b   : > { %s689_s10 = scalar_lea.vmem %s688_s27, 256  ;;  %p690_p2 = scmp.lt.s32.totalorder %s1085_s19, %s688_s27 }
  0x7c   : > { %p685_p13 = pnand %p683_p12, %p669_p9  ;;  %p691_p0 = scmp.lt.s32.totalorder %s689_s10, %s682_s14 }
  0x7e   : > { %p686_p8 = pneg %p685_p13  ;;  %p692_p5 = por %p691_p0, %p690_p2 }
  0x80   : > { %p693_p6 = pnand %p692_p5, %p686_p8 }
  0x82   : > { %696 = shalt.err (!%p693_p6)
}
  0x83   : > { %508 = dma.hbm_to_vmem [thread:$0]  (!%p1073_p4), %s1090_s23, 128, %s1085_s19, %s170_s17  }
  0x84   : > { %p1234_p10 = scmp.ne.s32.totalorder %s1225_s29, 0 }
  0x85   : > { %s192_s2 = sand.u32 (!%p1234_p10), 1, %s817_s9   ;;  %p1235_p9 = scmp.ne.s32.totalorder (!%p1234_p10), %s1219_s24, 0 }
  0x86   : > { %190 = sbr.rel (%p1234_p10) target bundleno = 503 (0x1f7), region = 28  ;;  %s471_s5 = sshll.u32 (!%p1234_p10), %s192_s2, 3 }
  0x87   : > { %s193_s20 = scalar_lea.sflag (!%p1234_p10), [#allocation6], %s192_s2  ;;  %s196_s22 = scalar_lea.vmem (!%p1234_p10), [#allocation5], %s471_s5 }
  0x8d   : > { %776 = dma.done.wait (%p1235_p9), %s193_s20, 128  }
  0x8e   : > { %778 = vsyncadd (%p1235_p9), %s193_s20, 4294967168  ;;  %s201_s15 = sand.u32 1, %s805_s6  }
  0x8f   : > { %s472_s21 = sshll.u32 %s201_s15, 3  ;;  %s202_s8 = scalar_lea.sflag [#allocation9], %s201_s15 }
  0x90   : > { %s205_s19 = scalar_lea.vmem [#allocation8], %s472_s21 }
  0x91   : > { %780 = dma.done.wait (%p1066_p11), %s202_s8, 128  }
  0x92   : > { %782 = vsyncadd (%p1066_p11), %s202_s8, 4294967168  ;;  %v839_v0 = vmov 0.0   ;;  %vm840_vm0 = vmmov 0   ;;  %v234_v1 = vld [vmem:[%s205_s19] sm:$0xff]  ;;  %v235_v2 = vld [vmem:[%s196_s22] sm:$0xff]  ;;  %vm268_vm1 = vcmask 64512  }
  0x93   : > { %481 = vmatprep.subr.mxu0 %v839_v0  ;;  %483 = vmatprep.mubr.msk.f32.mxu0 %vm840_vm0, %v839_v0  ;;  %p1236_p4 = scmp.ne.s32.totalorder %s1220_s26, 0  ;;  %s228_s29 = sand.u32 1, %s793_s1  }
  0x94   : > { %236 = vxpose.xlu0.b32.start.end [1/1] (short) (narrow) %v234_v1, 8  ;;  %482 = vmatpush3.msra.mxu0 %v235_v2  ;;  %s473_s23 = sshll.u32 %s228_s29, 3  ;;  %s344_s5 = scalar_lea.sflag [#allocation7], %s228_s29 }
  0x95   : > { %s494_s24 = scalar_select %p1236_p4, [#allocation4], [#allocation13] }
  0x96   : > { %s1262_s11 = smov (!%p1236_p4, %s825_s11), 0  ;;  %s230_s17 = scalar_lea.vmem [#allocation10], %s473_s23 }
  0x97   : > { %s351_s30 = sld [smem:[%s494_s24 + %s1262_s11]]  ;;  %s359_s14 = sshll.u32 %s230_s17, 4  ;;  %s1135_s14 = int_to_ptr.vmem [resolvable:$true] %s359_s14 }
  0x98   : > { %s697_s20 = scalar_lea.vmem %s1135_s14, 128  ;;  %s841_s11 = smov [#allocation10]  }
  0x99   : > { %p698_p11 = scmp.ne.s32.totalorder %s1135_s14, %s697_s20  ;;  %s701_s22 = sshll.u32 %s841_s11, 4  ;;  %s702_s22 = int_to_ptr.vmem [resolvable:$false] %s701_s22 }
  0x9a   : > { %s703_s15 = scalar_lea.vmem %s702_s22, 256  ;;  %p704_p1 = scmp.lt.s32.totalorder %s1135_s14, %s702_s22 }
  0x9b   : > { %p699_p3 = pnand %p698_p11, %p1236_p4  ;;  %p705_p12 = scmp.lt.s32.totalorder %s703_s15, %s697_s20 }
  0x9d   : > { %s476_s18 = sshll.u32 %s351_s30, 7  ;;  %p700_p7 = pneg %p699_p3 }
  0x9e   : > { %s1140_s2 = scalar_lea.hbm %s1206_s4, %s476_s18  ;;  %p706_p13 = por %p705_p12, %p704_p1 }
  0xa0   : > { %p707_p8 = pnand %p706_p13, %p700_p7 }
 0x114   : > { %v252_v3 = vpop.trf.xlu0 }
 0x115   : > { %484 = vmatmul.mubr.msk.f32.vlgmr.msra.gmra.mrb[0].mxu0 %vm268_vm1, %v252_v3 }
 0x1e8   : > { %v338_v4 = vpop.f32.mrb[0].mxu0 }
 0x1e9   : > { %342 = vst [vmem:[%s230_s17] sm:$0xff] %v338_v4  ;;  %v485_v5 = vpop.f32.mrb[1].mxu0 }
 0x1ea   : > { %710 = shalt.err (!%p707_p8)
}
 0x1eb   : > { %s711_s21 = scalar_lea.hbm %s1140_s2, 128  ;;  %s715_s24 = scalar_lea.hbm %s1206_s4, 512 }
 0x1ec   : > { %p712_p2 = scmp.ne.s32.totalorder %s1140_s2, %s711_s21  ;;  %p716_p6 = scmp.lt.u32.totalorder %s1140_s2, %s1206_s4 }
 0x1ed   : > { %p717_p10 = scmp.lt.u32.totalorder %s715_s24, %s711_s21  ;;  %p719_p11 = scmp.lt.u32.totalorder %s711_s21, %s1140_s2 }
 0x1ee   : > { %p713_p0 = pnand %p712_p2, %p1236_p4 }
 0x1ef   : > { %p718_p9 = por %p717_p10, %p716_p6 }
 0x1f0   : > { %p714_p5 = pneg %p713_p0 }
 0x1f1   : > { %p720_p3 = por %p719_p11, %p718_p9 }
 0x1f3   : > { %p721_p7 = pnand %p720_p3, %p714_p5 }
 0x1f5   : > { %724 = shalt.err (!%p721_p7)
}
 0x1f6   : > { %496 = dma.vmem_to_hbm [thread:$0]  (%p1236_p4), %s1135_s14, 128, %s1140_s2, %s344_s5  }
 0x1f7 PF: > { %p514_p1 = scmp.ge.s32.totalorder %s833_s13, 2  ;;  %s371_s23 = sand.u32 1, %s789_s0  }
 0x1f8   : > { %p1237_p12 = scmp.ne.s32.totalorder %s1221_s28, 0  ;;  %s372_s17 = scalar_lea.sflag [#allocation7], %s371_s23 }
 0x1fa   : > { %p510_p13 = pnand %p514_p1, %p1237_p12 }
 0x1fc   : > { %784 = dma.done.wait (!%p510_p13), %s372_s17, 128  }
 0x1fd   : > { %786 = vsyncadd (!%p510_p13), %s372_s17, 4294967168  ;;  %s31_s13 = sadd.s32 1, %s833_s13   ;;  %s1238_s18 = sld [smem:[#allocation20_spill]] }
 0x1fe   : > { %p28_p8 = scmp.ge.s32.totalorder %s31_s13, 6   ;;  %s1239_s30 = sld [smem:[#allocation23_spill]] }
 0x1ff   : > { %s1240_s26 = sld [smem:[#allocation21_spill]]  ;;  %s1241_s10 = sld [smem:[#allocation22_spill]] }
 0x200   : > { %s1242_s0 = smov %s793_s1  ;;  %s1244_s5 = smov %s805_s6 }
 0x201   : > { %s1245_s6 = smov %s809_s7  ;;  %s1246_s7 = smov %s1078_s25 }
 0x202   : > { %s1247_s8 = smov %s817_s9  ;;  %s1249_s11 = smov %s829_s12 }
 0x203   : > { %s1243_s1 = smov %s1238_s18  ;;  %s1250_s12 = smov %s1252_s16 }
 0x204   :  { %30 = sbr.rel (!%p28_p8) target bundleno = 33 (0x21), region = 86 }
 0x205   : > { %s1248_s9 = smov %s1240_s26 }
 0x20b   :  { %377 = vsyncpa [#allocation6], 1 }
 0x20c   :  { %379 = vsyncpa [#allocation6 + $0x1], 1 }
 0x20d   :  { %380 = vsyncpa [#allocation9], 1 }
 0x20e   :  { %382 = vsyncpa [#allocation9 + $0x1], 1 }
 0x20f   :  { %383 = vsyncpa [#allocation7], 1 }
 0x210   :  { %385 = vsyncpa [#allocation7 + $0x1], 1 }

</bundles_post_ra>
